<compile_context>
chip_gen: v7x
topology: tpu7x:2x2x1
jax: 0.10.0
libtpu: 0.0.40
codegen_flags: <defaults>
</compile_context>

<pallas_src>
import functools

import jax
import jax.numpy as jnp
from jax.experimental import pallas as pl
from jax.experimental.pallas import tpu as pltpu

EPS = 1e-5


def _conv_stats_kernel(x_ref, w_ref, y_ref, stats_ref, *, k_taps, t_o, lo_valid,
                       pad_rows):
    """Pass 1: fused direct+residual conv (single K*Cin-deep matmul) + BN statistics.

    x_ref     : (2, Cin, t_o + 8)   stacked [even, odd] stride-phase windows
    w_ref     : (2*Cout, KC_pad)    fused flat weights (residual folded into tap k=pad)
    y_ref     : (2*Cout, t_o)       pre-BN activations [direct ; residual] (f32 or bf16)
    stats_ref : (2*Cout, 2)         per-tile per-channel [sum, sum_of_squares] (f32)
    """
    ew = x_ref[0]                    # (Cin, win)
    ow = x_ref[1]
    pieces = []
    for k in range(k_taps):          # static unroll: 15 contiguous (Cin, t_o) slices
        ph = ew if (k % 2 == 0) else ow
        k2 = k // 2
        pieces.append(ph[:, k2:k2 + t_o])
    if pad_rows:
        pieces.append(jnp.zeros((pad_rows, t_o), ew.dtype))
    big = jnp.concatenate(pieces, axis=0)                  # (KC_pad, t_o)

    # One MXU matmul, contraction depth K*Cin (vs 15 depth-Cin matmuls before).
    acc = jnp.dot(w_ref[...], big, preferred_element_type=jnp.float32)
    y_ref[...] = acc.astype(y_ref.dtype)

    # BN statistics (E[x] / E[x^2] form) from the f32 accumulator.  Only the last
    # lane tile needs masking of the padded output columns.
    def write_stats(vals):
        stats_ref[:, 0:1] = jnp.sum(vals, axis=1, keepdims=True)
        stats_ref[:, 1:2] = jnp.sum(vals * vals, axis=1, keepdims=True)

    rem = lo_valid % t_o
    if rem != 0:
        last = pl.num_programs(1) - 1

        @pl.when(pl.program_id(1) == last)
        def _():
            col = jax.lax.broadcasted_iota(jnp.int32, acc.shape, 1)
            write_stats(jnp.where(col < rem, acc, 0.0))

        @pl.when(pl.program_id(1) != last)
        def _():
            write_stats(acc)
    else:
        write_stats(acc)


def _bn_prelu_add_kernel(y_ref, scale_ref, shift_ref, alpha_ref, out_ref):
    """Pass 2: folded BatchNorm affine + PReLU (direct branch) + residual add.

    y_ref     : (2*Cout, t_o)  pre-BN activations [direct ; residual] (f32 or bf16)
    scale_ref : (2*Cout, 1)    gamma * rsqrt(var + eps)
    shift_ref : (2*Cout, 1)    beta - mean * scale
    alpha_ref : (1,) in SMEM   shared PReLU slope
    out_ref   : (Cout, t_o)    f32, NCW layout
    """
    cout = out_ref.shape[0]
    z = y_ref[...].astype(jnp.float32) * scale_ref[...] + shift_ref[...]
    zd = z[:cout, :]
    zr = z[cout:, :]
    alpha = alpha_ref[0]
    out_ref[...] = jnp.where(zd >= 0, zd, alpha * zd) + zr


def _make_phase_windows(phase, n_t, t_o, halo):
    """(N, Cin, Lph) -> (N, Cin, n_t, t_o + halo) via reshape + contiguous halo slices."""
    N, Cin, Lph = phase.shape
    need = n_t * t_o + halo
    if Lph < need:
        phase = jnp.pad(phase, ((0, 0), (0, 0), (0, need - Lph)))
    body = phase[:, :, :n_t * t_o].reshape(N, Cin, n_t, t_o)
    halos = jnp.stack(
        [phase[:, :, (j + 1) * t_o:(j + 1) * t_o + halo] for j in range(n_t)], axis=2)
    return jnp.concatenate([body, halos], axis=-1)


def enc_block_forward(x, params, *, kernel_size=15, stride=2, padding=7, t_o=512,
                      y_dtype=jnp.bfloat16):
    """x: (N, C_in, L) float32, NCW like PyTorch Conv1d. Returns (N, C_out, L_out)."""
    Wd, bd, Wr, br, gd, betad, gr, betar, alpha = params
    del bd, br  # conv biases are exactly cancelled by train-mode BatchNorm mean removal
    N, Cin, L = x.shape
    Cout, _, K = Wd.shape
    assert K == kernel_size and stride == 2 and 0 <= padding < K
    assert t_o % 128 == 0
    C2 = 2 * Cout
    KC = K * Cin
    KC_pad = ((KC + 7) // 8) * 8      # pad contraction depth to a sublane multiple
    pad_rows = KC_pad - KC

    Lp = L + 2 * padding
    Lo = (Lp - K) // stride + 1
    assert Lo == (L - 1) // stride + 1, "direct / residual branch lengths must match"

    n_t = pl.cdiv(Lo, t_o)
    lo_pad = n_t * t_o
    halo = (K - 1) // 2 + 1            # 8: extra phase positions needed per window
    win = t_o + halo

    # ---- glue (plain JAX, ~1.03x data; no gather, no im2col) --------------------
    xp = jnp.pad(x, ((0, 0), (0, 0), (padding, padding)))            # (N, Cin, Lp)
    even = xp[:, :, 0::2]
    odd = xp[:, :, 1::2]
    ew = _make_phase_windows(even, n_t, t_o, halo)                    # (N, Cin, n_t, win)
    ow = _make_phase_windows(odd, n_t, t_o, halo)
    # Single stacked input: (N, n_t, 2, Cin, win) -> one BlockSpec / one DMA per step.
    xin = jnp.stack([ew, ow], axis=0).transpose(1, 3, 0, 2, 4)
    # TODO(synk): optional bf16 cast of xin/wf for the MXU (v6e/v7x); kept f32 so the
    # f32 path matches the reference at 1e-3.

    # Fused flat weights: rows [0:Cout] = direct k=15 conv, rows [Cout:] = 1x1 residual
    # conv (its input for output o is exactly tap k = padding of the direct conv).
    wd_flat = jnp.transpose(Wd, (0, 2, 1)).reshape(Cout, KC)          # [c, k*Cin + i]
    wr_flat = jnp.zeros((Cout, KC), jnp.float32)
    wr_flat = wr_flat.at[:, padding * Cin:(padding + 1) * Cin].set(Wr[:, :, 0])
    wf = jnp.concatenate([wd_flat, wr_flat], axis=0)                  # (C2, KC)
    if pad_rows:
        wf = jnp.pad(wf, ((0, 0), (0, pad_rows)))                     # (C2, KC_pad)

    cparams = pltpu.CompilerParams(
        dimension_semantics=("parallel", "parallel"),
        vmem_limit_bytes=32 * 1024 * 1024,   # tiles are tiny; <= 48 MiB keeps v7x safe
    )

    x_spec = pl.BlockSpec((None, None, 2, Cin, win), lambda n, j: (n, j, 0, 0, 0))
    w_spec = pl.BlockSpec((C2, KC_pad), lambda n, j: (0, 0))
    y_spec = pl.BlockSpec((None, C2, t_o), lambda n, j: (n, 0, j))

    # ---- pass 1: fused conv matmul + per-tile statistics -------------------------
    y_all, stats = pl.pallas_call(
        functools.partial(_conv_stats_kernel, k_taps=K, t_o=t_o, lo_valid=Lo,
                          pad_rows=pad_rows),
        grid=(N, n_t),
        in_specs=[x_spec, w_spec],
        out_specs=(y_spec,
                   pl.BlockSpec((None, None, C2, 2), lambda n, j: (n, j, 0, 0))),
        out_shape=(jax.ShapeDtypeStruct((N, C2, lo_pad), y_dtype),
                   jax.ShapeDtypeStruct((N, n_t, C2, 2), jnp.float32)),
        compiler_params=cparams,
    )(xin, wf)

    # ---- tiny global-BN finalize in plain JAX (2 * 2*Cout numbers) ---------------
    tot = jnp.sum(stats, axis=(0, 1))                 # (C2, 2)
    cnt = jnp.float32(N * Lo)
    mean = tot[:, 0] / cnt
    var = tot[:, 1] / cnt - mean * mean               # biased (training-mode) variance
    gamma = jnp.concatenate([gd, gr])
    beta = jnp.concatenate([betad, betar])
    inv = jax.lax.rsqrt(var + EPS)
    scale = (gamma * inv).reshape(C2, 1)
    shift = (beta - mean * gamma * inv).reshape(C2, 1)

    # ---- pass 2: normalize + PReLU + residual add, write NCW directly ------------
    out_all = pl.pallas_call(
        _bn_prelu_add_kernel,
        grid=(N, n_t),
        in_specs=[y_spec,
                  pl.BlockSpec((C2, 1), lambda n, j: (0, 0)),
                  pl.BlockSpec((C2, 1), lambda n, j: (0, 0)),
                  pl.BlockSpec(memory_space=pltpu.MemorySpace.SMEM)],
        out_specs=pl.BlockSpec((None, Cout, t_o), lambda n, j: (n, 0, j)),
        out_shape=jax.ShapeDtypeStruct((N, Cout, lo_pad), jnp.float32),
        compiler_params=cparams,
    )(y_all, scale, shift, alpha)

    if lo_pad == Lo:
        return out_all
    # TODO(synk): return the lo_pad-wide buffer and slice lazily downstream to avoid
    # this extra full-output HBM copy.
    return out_all[:, :, :Lo]


def ref_forward(x, params, *, stride=2, padding=7):
    """Pure-JAX reference replicating the PyTorch forward (train-mode BN)."""
    Wd, bd, Wr, br, gd, betad, gr, betar, alpha = params
    hi = jax.lax.Precision.HIGHEST
    yd = jax.lax.conv_general_dilated(
        x, Wd, (stride,), [(padding, padding)],
        dimension_numbers=("NCH", "OIH", "NCH"), precision=hi) + bd[None, :, None]
    yr = jax.lax.conv_general_dilated(
        x, Wr, (stride,), [(0, 0)],
        dimension_numbers=("NCH", "OIH", "NCH"), precision=hi) + br[None, :, None]

    def bn(y, g, b):
        mu = y.mean(axis=(0, 2), keepdims=True)
        var = ((y - mu) ** 2).mean(axis=(0, 2), keepdims=True)
        return (y - mu) * jax.lax.rsqrt(var + EPS) * g[None, :, None] + b[None, :, None]

    yd_n = bn(yd, gd, betad)
    yr_n = bn(yr, gr, betar)
    act = jnp.where(yd_n >= 0, yd_n, alpha[0] * yd_n)
    return act + yr_n


def init_params(key, in_channels, out_channels, kernel_size=15):
    k = jax.random.split(key, 4)
    Wd = 0.1 * jax.random.normal(k[0], (out_channels, in_channels, kernel_size), jnp.float32)
    bd = 0.1 * jax.random.normal(k[1], (out_channels,), jnp.float32)
    Wr = 0.1 * jax.random.normal(k[2], (out_channels, in_channels, 1), jnp.float32)
    br = 0.1 * jax.random.normal(k[3], (out_channels,), jnp.float32)
    # BatchNorm / PReLU defaults, exactly as nn.BatchNorm1d / nn.PReLU __init__
    gd = jnp.ones((out_channels,), jnp.float32)
    betad = jnp.zeros((out_channels,), jnp.float32)
    gr = jnp.ones((out_channels,), jnp.float32)
    betar = jnp.zeros((out_channels,), jnp.float32)
    alpha = jnp.full((1,), 0.25, jnp.float32)
    return (Wd, bd, Wr, br, gd, betad, gr, betar, alpha)


if __name__ == "__main__":
    key = jax.random.PRNGKey(0)
    kx, kp = jax.random.split(key)

    # Lo = 1000 -> 2 lane tiles of 512 (last one masked and sliced).
    N, Cin, Cout, L = 2, 4, 8, 2000
    x = jax.random.normal(kx, (N, Cin, L), jnp.float32)
    params = init_params(kp, Cin, Cout, kernel_size=15)

    ref = jax.block_until_ready(ref_forward(x, params, stride=2, padding=7))

    # f32 intermediate path: tight agreement with the f32 reference.
    out = jax.block_until_ready(
        enc_block_forward(x, params, kernel_size=15, stride=2, padding=7,
                          t_o=512, y_dtype=jnp.float32))
    assert out.shape == ref.shape == (N, Cout, 1000), out.shape
    max_err = float(jnp.max(jnp.abs(out - ref)))
    assert jnp.allclose(out, ref, rtol=1e-3, atol=1e-3), max_err

    # bf16 y_all round-trip (default, halves the dominant HBM traffic): looser check.
    out_bf = jax.block_until_ready(
        enc_block_forward(x, params, kernel_size=15, stride=2, padding=7,
                          t_o=512, y_dtype=jnp.bfloat16))
    max_err_bf = float(jnp.max(jnp.abs(out_bf - ref)))
    assert jnp.allclose(out_bf, ref, rtol=5e-2, atol=5e-2), max_err_bf

    print("KERNEL_OK")
</pallas_src>

<mosaic_0001>
module attributes {stable_mosaic.version = 11 : i64} {
  func.func @_conv_stats_kernel(%arg0: i32, %arg1: i32, %arg2: memref<1x1x2x4x520xf32, #tpu.memory_space<vmem>>, %arg3: memref<16x64xf32, #tpu.memory_space<vmem>>, %arg4: memref<1x16x512xf32, #tpu.memory_space<vmem>>, %arg5: memref<1x1x16x2xf32, #tpu.memory_space<vmem>>) attributes {dimension_semantics = [#tpu.dimension_semantics<parallel>, #tpu.dimension_semantics<parallel>], iteration_bounds = array<i64: 2, 2>, scalar_prefetch = 0 : i64, scratch_operands = 0 : i64, tpu.core_type = #tpu.core_type<tc>, window_params = [{transform_indices = @transform_0, window_bounds = array<i64: 1, 1, 2, 4, 520>}, {pipeline_mode = #tpu.pipeline_mode<synchronous>, transform_indices = @transform_1, window_bounds = array<i64: 16, 64>}, {transform_indices = @transform_2, window_bounds = array<i64: 1, 16, 512>}, {transform_indices = @transform_3, window_bounds = array<i64: 1, 1, 16, 2>}]} {
    %c0 = arith.constant 0 : index
    %c0_0 = arith.constant 0 : index
    %c0_1 = arith.constant 0 : index
    %c0_2 = arith.constant 0 : index
    %c0_3 = arith.constant 0 : index
    %0 = vector.load %arg2[%c0, %c0_0, %c0_1, %c0_2, %c0_3] : memref<1x1x2x4x520xf32, #tpu.memory_space<vmem>>, vector<1x1x1x4x520xf32>
    %1 = vector.shape_cast %0 : vector<1x1x1x4x520xf32> to vector<4x520xf32>
    %c0_4 = arith.constant 0 : index
    %c0_5 = arith.constant 0 : index
    %c1 = arith.constant 1 : index
    %c0_6 = arith.constant 0 : index
    %c0_7 = arith.constant 0 : index
    %2 = vector.load %arg2[%c0_4, %c0_5, %c1, %c0_6, %c0_7] : memref<1x1x2x4x520xf32, #tpu.memory_space<vmem>>, vector<1x1x1x4x520xf32>
    %3 = vector.shape_cast %2 : vector<1x1x1x4x520xf32> to vector<4x520xf32>
    %4 = vector.extract_strided_slice %1 {offsets = [0, 0], sizes = [4, 512], strides = [1, 1]} : vector<4x520xf32> to vector<4x512xf32>
    %5 = vector.extract_strided_slice %3 {offsets = [0, 0], sizes = [4, 512], strides = [1, 1]} : vector<4x520xf32> to vector<4x512xf32>
    %6 = vector.extract_strided_slice %1 {offsets = [0, 1], sizes = [4, 512], strides = [1, 1]} : vector<4x520xf32> to vector<4x512xf32>
    %7 = vector.extract_strided_slice %3 {offsets = [0, 1], sizes = [4, 512], strides = [1, 1]} : vector<4x520xf32> to vector<4x512xf32>
    %8 = vector.extract_strided_slice %1 {offsets = [0, 2], sizes = [4, 512], strides = [1, 1]} : vector<4x520xf32> to vector<4x512xf32>
    %9 = vector.extract_strided_slice %3 {offsets = [0, 2], sizes = [4, 512], strides = [1, 1]} : vector<4x520xf32> to vector<4x512xf32>
    %10 = vector.extract_strided_slice %1 {offsets = [0, 3], sizes = [4, 512], strides = [1, 1]} : vector<4x520xf32> to vector<4x512xf32>
    %11 = vector.extract_strided_slice %3 {offsets = [0, 3], sizes = [4, 512], strides = [1, 1]} : vector<4x520xf32> to vector<4x512xf32>
    %12 = vector.extract_strided_slice %1 {offsets = [0, 4], sizes = [4, 512], strides = [1, 1]} : vector<4x520xf32> to vector<4x512xf32>
    %13 = vector.extract_strided_slice %3 {offsets = [0, 4], sizes = [4, 512], strides = [1, 1]} : vector<4x520xf32> to vector<4x512xf32>
    %14 = vector.extract_strided_slice %1 {offsets = [0, 5], sizes = [4, 512], strides = [1, 1]} : vector<4x520xf32> to vector<4x512xf32>
    %15 = vector.extract_strided_slice %3 {offsets = [0, 5], sizes = [4, 512], strides = [1, 1]} : vector<4x520xf32> to vector<4x512xf32>
    %16 = vector.extract_strided_slice %1 {offsets = [0, 6], sizes = [4, 512], strides = [1, 1]} : vector<4x520xf32> to vector<4x512xf32>
    %17 = vector.extract_strided_slice %3 {offsets = [0, 6], sizes = [4, 512], strides = [1, 1]} : vector<4x520xf32> to vector<4x512xf32>
    %18 = vector.extract_strided_slice %1 {offsets = [0, 7], sizes = [4, 512], strides = [1, 1]} : vector<4x520xf32> to vector<4x512xf32>
    %cst = arith.constant 0.000000e+00 : f32
    %19 = vector.broadcast %cst : f32 to vector<4x512xf32>
    %20 = tpu.concatenate %4, %5, %6, %7, %8, %9, %10, %11, %12, %13, %14, %15, %16, %17, %18, %19 in 0 : vector<4x512xf32>, vector<4x512xf32>, vector<4x512xf32>, vector<4x512xf32>, vector<4x512xf32>, vector<4x512xf32>, vector<4x512xf32>, vector<4x512xf32>, vector<4x512xf32>, vector<4x512xf32>, vector<4x512xf32>, vector<4x512xf32>, vector<4x512xf32>, vector<4x512xf32>, vector<4x512xf32>, vector<4x512xf32> -> vector<64x512xf32>
    %c0_8 = arith.constant 0 : index
    %c0_9 = arith.constant 0 : index
    %21 = vector.load %arg3[%c0_8, %c0_9] : memref<16x64xf32, #tpu.memory_space<vmem>>, vector<16x64xf32>
    %cst_10 = arith.constant dense<0.000000e+00> : vector<16x512xf32>
    %22 = tpu.matmul %21, %20, %cst_10 {dimension_numbers = #tpu.dot_dimension_numbers<[1], [0], [0], [1], [0, 0, 1, 1], [], []>} : vector<16x64xf32>, vector<64x512xf32>, vector<16x512xf32> -> vector<16x512xf32>
    %c0_11 = arith.constant 0 : index
    %c0_12 = arith.constant 0 : index
    %c0_13 = arith.constant 0 : index
    %23 = vector.load %arg4[%c0_11, %c0_12, %c0_13] : memref<1x16x512xf32, #tpu.memory_space<vmem>>, vector<1x16x512xf32>
    %24 = vector.shape_cast %23 : vector<1x16x512xf32> to vector<16x512xf32>
    %25 = vector.shape_cast %22 : vector<16x512xf32> to vector<1x16x512xf32>
    tpu.vector_store %arg4[%c0_11, %c0_12, %c0_13], %25 {strides = array<i32>} : memref<1x16x512xf32, #tpu.memory_space<vmem>>, vector<1x16x512xf32>,
    %c1_i32 = arith.constant 1 : i32
    %26 = arith.cmpi eq, %arg1, %c1_i32 : i32
    %27 = arith.extui %26 : i1 to i32
    %c0_i32 = arith.constant 0 : i32
    %28 = arith.cmpi ne, %27, %c0_i32 : i32
    scf.if %28 {
      %32 = tpu.iota {dimensions = array<i32: 1>} : vector<16x512xi32>
      %c488_i32 = arith.constant 488 : i32
      %33 = vector.broadcast %c488_i32 : i32 to vector<16x512xi32>
      %34 = arith.cmpi slt, %32, %33 : vector<16x512xi32>
      %cst_16 = arith.constant 0.000000e+00 : f32
      %35 = vector.broadcast %cst_16 : f32 to vector<16x512xf32>
      %36 = arith.select %34, %22, %35 : vector<16x512xi1>, vector<16x512xf32>
      %cst_17 = arith.constant dense<0.000000e+00> : vector<16xf32>
      %37 = vector.multi_reduction <add>, %36, %cst_17 [1] : vector<16x512xf32> to vector<16xf32>
      %38 = vector.shape_cast %37 : vector<16xf32> to vector<16x1xf32>
      %c0_18 = arith.constant 0 : index
      %c0_19 = arith.constant 0 : index
      %c0_20 = arith.constant 0 : index
      %c0_21 = arith.constant 0 : index
      %39 = vector.load %arg5[%c0_18, %c0_19, %c0_20, %c0_21] : memref<1x1x16x2xf32, #tpu.memory_space<vmem>>, vector<1x1x16x1xf32>
      %40 = vector.shape_cast %39 : vector<1x1x16x1xf32> to vector<16x1xf32>
      %41 = vector.shape_cast %38 : vector<16x1xf32> to vector<1x1x16x1xf32>
      tpu.vector_store %arg5[%c0_18, %c0_19, %c0_20, %c0_21], %41 {strides = array<i32>} : memref<1x1x16x2xf32, #tpu.memory_space<vmem>>, vector<1x1x16x1xf32>,
      %42 = arith.mulf %36, %36 : vector<16x512xf32>
      %cst_22 = arith.constant dense<0.000000e+00> : vector<16xf32>
      %43 = vector.multi_reduction <add>, %42, %cst_22 [1] : vector<16x512xf32> to vector<16xf32>
      %44 = vector.shape_cast %43 : vector<16xf32> to vector<16x1xf32>
      %c0_23 = arith.constant 0 : index
      %c0_24 = arith.constant 0 : index
      %c0_25 = arith.constant 0 : index
      %c1_26 = arith.constant 1 : index
      %45 = vector.load %arg5[%c0_23, %c0_24, %c0_25, %c1_26] : memref<1x1x16x2xf32, #tpu.memory_space<vmem>>, vector<1x1x16x1xf32>
      %46 = vector.shape_cast %45 : vector<1x1x16x1xf32> to vector<16x1xf32>
      %47 = vector.shape_cast %44 : vector<16x1xf32> to vector<1x1x16x1xf32>
      tpu.vector_store %arg5[%c0_23, %c0_24, %c0_25, %c1_26], %47 {strides = array<i32>} : memref<1x1x16x2xf32, #tpu.memory_space<vmem>>, vector<1x1x16x1xf32>,
    } else {
    }
    %c1_i32_14 = arith.constant 1 : i32
    %29 = arith.cmpi ne, %arg1, %c1_i32_14 : i32
    %30 = arith.extui %29 : i1 to i32
    %c0_i32_15 = arith.constant 0 : i32
    %31 = arith.cmpi ne, %30, %c0_i32_15 : i32
    scf.if %31 {
      %cst_16 = arith.constant dense<0.000000e+00> : vector<16xf32>
      %32 = vector.multi_reduction <add>, %22, %cst_16 [1] : vector<16x512xf32> to vector<16xf32>
      %33 = vector.shape_cast %32 : vector<16xf32> to vector<16x1xf32>
      %c0_17 = arith.constant 0 : index
      %c0_18 = arith.constant 0 : index
      %c0_19 = arith.constant 0 : index
      %c0_20 = arith.constant 0 : index
      %34 = vector.load %arg5[%c0_17, %c0_18, %c0_19, %c0_20] : memref<1x1x16x2xf32, #tpu.memory_space<vmem>>, vector<1x1x16x1xf32>
      %35 = vector.shape_cast %34 : vector<1x1x16x1xf32> to vector<16x1xf32>
      %36 = vector.shape_cast %33 : vector<16x1xf32> to vector<1x1x16x1xf32>
      tpu.vector_store %arg5[%c0_17, %c0_18, %c0_19, %c0_20], %36 {strides = array<i32>} : memref<1x1x16x2xf32, #tpu.memory_space<vmem>>, vector<1x1x16x1xf32>,
      %37 = arith.mulf %22, %22 : vector<16x512xf32>
      %cst_21 = arith.constant dense<0.000000e+00> : vector<16xf32>
      %38 = vector.multi_reduction <add>, %37, %cst_21 [1] : vector<16x512xf32> to vector<16xf32>
      %39 = vector.shape_cast %38 : vector<16xf32> to vector<16x1xf32>
      %c0_22 = arith.constant 0 : index
      %c0_23 = arith.constant 0 : index
      %c0_24 = arith.constant 0 : index
      %c1_25 = arith.constant 1 : index
      %40 = vector.load %arg5[%c0_22, %c0_23, %c0_24, %c1_25] : memref<1x1x16x2xf32, #tpu.memory_space<vmem>>, vector<1x1x16x1xf32>
      %41 = vector.shape_cast %40 : vector<1x1x16x1xf32> to vector<16x1xf32>
      %42 = vector.shape_cast %39 : vector<16x1xf32> to vector<1x1x16x1xf32>
      tpu.vector_store %arg5[%c0_22, %c0_23, %c0_24, %c1_25], %42 {strides = array<i32>} : memref<1x1x16x2xf32, #tpu.memory_space<vmem>>, vector<1x1x16x1xf32>,
    } else {
    }
    return
  }
  func.func @transform_0(%arg0: i32, %arg1: i32) -> (i32, i32, i32, i32, i32) {
    %c0_i32 = arith.constant 0 : i32
    %c0_i32_0 = arith.constant 0 : i32
    %c0_i32_1 = arith.constant 0 : i32
    %c0_i32_2 = arith.constant 0 : i32
    return %arg0, %arg1, %c0_i32, %c0_i32_0, %c0_i32_1 : i32, i32, i32, i32, i32
  }
  func.func @transform_1(%arg0: i32, %arg1: i32) -> (i32, i32) {
    %c0_i32 = arith.constant 0 : i32
    %c0_i32_0 = arith.constant 0 : i32
    %c0_i32_1 = arith.constant 0 : i32
    return %c0_i32, %c0_i32_0 : i32, i32
  }
  func.func @transform_2(%arg0: i32, %arg1: i32) -> (i32, i32, i32) {
    %c0_i32 = arith.constant 0 : i32
    %c0_i32_0 = arith.constant 0 : i32
    return %arg0, %c0_i32, %arg1 : i32, i32, i32
  }
  func.func @transform_3(%arg0: i32, %arg1: i32) -> (i32, i32, i32, i32) {
    %c0_i32 = arith.constant 0 : i32
    %c0_i32_0 = arith.constant 0 : i32
    %c0_i32_1 = arith.constant 0 : i32
    return %arg0, %arg1, %c0_i32, %c0_i32_0 : i32, i32, i32, i32
  }
}

</mosaic_0001>

<bundles_post_ra>
// kernel: tpu_custom_call.1
= control target key start
LH: loop header
LB: loop body
LE: loop exit
PB: predicated region body
PF: predicated region fallthrough
CT: control target
= control target key end

     0   :  { %s1928_s0 = inlined_call_operand.hbm [shape: f32[2,2,2,4,520], index: 0, kind: input, shape index: {}]   ;;  %s1929_s1 = inlined_call_operand.hbm [shape: f32[16,64], index: 1, kind: input, shape index: {}]   ;;  %s1930_s2 = inlined_call_operand.hbm [shape: f32[2,16,1024], index: 2, kind: output, shape index: {0}]   ;;  %s1931_s3 = inlined_call_operand.vmem [shape: f32[2,2,16,2], index: 3, kind: output, shape index: {1}]  }
   0x1   :  { %1939 = sst [smem:[#allocation14_spill]] %s1929_s1 }
   0x2   :  { %9 = vsyncpa [#allocation3], 0 }
   0x3   :  { %11 = vsyncpa [#allocation3 + $0x1], 0 }
   0x4   :  { %12 = vsyncpa [#allocation6], 0 }
   0x5   :  { %13 = vsyncpa [#allocation4], 0 }
   0x6   :  { %15 = vsyncpa [#allocation4 + $0x1], 0  ;;  %s1517_s12 = smov 0   ;;  %s1519_s13 = smov 0  }
   0x7   :  { %s1521_s14 = smov 0   ;;  %s1523_s15 = smov 0  }
   0x8   :  { %s1525_s16 = smov 0   ;;  %s1527_s17 = smov 0  }
   0x9   :  { %s1529_s18 = smov 0   ;;  %s1531_s19 = smov 0  }
   0xa LB: > { %1940 = sst [smem:[#allocation11_spill]] %s1468_s17  ;;  %s975_s20 = sadd.s32 4294967295, %s1476_s19   ;;  %s1476_s19 = sphi %s1531_s19, %s21_s19   ;;  %s1472_s18 = sphi %s1529_s18, %s1964_s18   ;;  %s1468_s17 = sphi %s1527_s17, %s1958_s17   ;;  %s1464_s16 = sphi %s1525_s16, %s1963_s16   ;;  %s1460_s15 = sphi %s1523_s15, %s1957_s15   ;;  %s1456_s14 = sphi %s1521_s14, %s1962_s14   ;;  %s1452_s13 = sphi %s1519_s13, %s1961_s13   ;;  %s1448_s12 = sphi %s1517_s12, %s1960_s12  }
   0xb   : > { %s976_s21 = sadd.s32 4294967294, %s1476_s19   ;;  %p55_p0 = scmp.ne.s32.totalorder %s1452_s13, %s1448_s12 }
   0xc   : > { %p1561_p1 = scmp.eq.s32.totalorder %s975_s20, 0  ;;  %p1565_p2 = scmp.eq.s32.totalorder %s975_s20, 3 }
   0xd   : > { %p108_p3 = scmp.eq.s32.totalorder %s976_s21, 3  ;;  %p977_p5 = scmp.ge.s32.totalorder %s1476_s19, 1 }
   0xe   : > { %s1941_s22 = scalar_select %p1561_p1, 1, 0 }
   0xf   : > { %s1942_s23 = scalar_select %p1565_p2, 1, 0 }
  0x10   : > { %p1571_p4 = por %p1561_p1, %p55_p0  ;;  %p1576_p6 = por %p108_p3, %p55_p0 }
  0x11   : > { %p143_p7 = scmp.lt.s32.totalorder %s1476_s19, 5  ;;  %s1478_s27 = smov [#allocation5]  }
  0x12   : > { %s1943_s24 = scalar_select %p1571_p4, 1, 0 }
  0x13   : > { %s1944_s25 = scalar_select %p1576_p6, 1, 0 }
  0x14   : > { %p1581_p8 = pnand %p977_p5, %p143_p7  ;;  %s155_s28 = sshll.u32 %s1478_s27, 4  ;;  %s156_s28 = int_to_ptr.vmem [resolvable:$true] %s155_s28 }
  0x15   : > { %s1947_s1 = sld [smem:[#allocation14_spill]] }
  0x16   : > { %s1945_s26 = scalar_select %p1581_p8, 1, 0 }
  0x17   : > { %p1054_p9 = pneg %p1581_p8 }
  0x19   : > { %p1589_p10 = pnand %p1054_p9, %p1561_p1 }
  0x1b   : > { %s1316_s5 = scalar_lea.hbm %s1947_s1, 256  ;;  %p1318_p12 = pneg %p1589_p10 }
  0x1c   : > { %p1317_p11 = scmp.ne.s32.totalorder %s1947_s1, %s1316_s5  ;;  %p1323_p3 = scmp.lt.u32.totalorder %s1316_s5, %s1947_s1 }
  0x1e   : > { %p1319_p13 = pnand %p1318_p12, %p1317_p11 }
  0x20   : > { %p1320_p0 = pneg %p1319_p13 }
  0x22   : > { %p1325_p5 = pnand %p1323_p3, %p1320_p0 }
  0x24   : > { %1328 = shalt.err (!%p1325_p5)
}
  0x25   : > { %s1329_s10 = scalar_lea.vmem %s156_s28, 256  ;;  %p1337_p1 = scmp.lt.s32.totalorder %s156_s28, %s156_s28 }
  0x26   : > { %p1330_p7 = scmp.ne.s32.totalorder %s156_s28, %s1329_s10  ;;  %p1338_p4 = scmp.lt.s32.totalorder %s1329_s10, %s1329_s10 }
  0x28   : > { %p1332_p9 = pnand %p1330_p7, %p1318_p12  ;;  %p1339_p8 = por %p1338_p4, %p1337_p1 }
  0x2a   : > { %p1333_p6 = pneg %p1332_p9 }
  0x2c   : > { %p1340_p2 = pnand %p1339_p8, %p1333_p6 }
  0x2e   : > { %1343 = shalt.err (!%p1340_p2)
}
  0x2f   : > { %s1479_s11 = smov 128   ;;  %s1480_s20 = smov 8  }
  0x30   : > { %1057 = dma.hbm_to_vmem [thread:$0]  (!%p1589_p10), %s1947_s1, 256, %s156_s28, [#allocation6], %s1479_s11, %s1479_s11, %s1480_s20  }
  0x31   : > { %s30_s30 = sadd.s32 1, %s1468_s17  ;;  %s33_s4 = sadd.s32 1, %s1472_s18 }
  0x32   : > { %p31_p1 = scmp.ge.s32.totalorder %s30_s30, 2  ;;  %s42_s5 = sadd.s32 1, %s1456_s14 }
  0x33   : > { %p49_p2 = scmp.ne.s32.totalorder %s1456_s14, %s1452_s13  ;;  %p50_p4 = scmp.eq.s32.totalorder %s1476_s19, 0 }
  0x34   : > { %s1966_s30 = smov (%p31_p1, %s30_s30), 0  ;;  %s1968_s4 = smov (!%p31_p1, %s33_s4), %s1472_s18 }
  0x35   : > { %1948 = sst [smem:[#allocation12_spill]] %s1966_s30  ;;  %s38_s6 = ssub.s32 %s1468_s17, %s1966_s30 }
  0x36   : > { %p35_p6 = scmp.ge.s32.totalorder %s1968_s4, 2  ;;  %p1949_p8 = scmp.ne.s32.totalorder %s1942_s23, 0 }
  0x37   : > { %p51_p10 = por %p50_p4, %p49_p2  ;;  %p1067_p12 = scmp.lt.s32.totalorder %s1476_s19, 4 }
  0x38   : > { %p1622_p11 = por %p1949_p8, %p49_p2  ;;  %s1970_s4 = smov (%p35_p6, %s1968_s4), 0 }
  0x39   : > { %1951 = sst [smem:[#allocation13_spill]] %s1970_s4  ;;  %s169_s28 = sand.u32 1, %s1456_s14  }
  0x3a   : > { %s1043_s7 = smul.u32 10, %s1468_s17  ;;  %s37_s8 = ssub.s32 %s1472_s18, %s1970_s4 }
  0x3b   : > { %s39_s9 = sor.u32 %s38_s6, %s37_s8  ;;  %s1042_s10 = smul.u32 40, %s169_s28 }
  0x3c   : > { %p40_p13 = scmp.eq.s32.totalorder %s39_s9, 0  ;;  %s1044_s11 = smul.u32 20, %s1472_s18 }
  0x3d   : > { %p1634_p0 = pnand %p1067_p12, %p51_p10  ;;  %s173_s27 = scalar_lea.vmem [#allocation2], %s1042_s10 }
  0x3e   : > { %s1639_s23 = scalar_select %p40_p13, %s1456_s14, %s42_s5  }
  0x3f   : > { %s179_s21 = sadd.s32 %s1044_s11, %s1043_s7  ;;  %s182_s1 = sshll.u32 %s173_s27, 4  ;;  %s1641_s1 = int_to_ptr.vmem [resolvable:$true] %s182_s1 }
  0x40   : > { %s980_s30 = sshll.u32 %s179_s21, 6  ;;  %s1648_s8 = scalar_lea.sflag [#allocation3], %s169_s28 }
  0x41   : > { %s1646_s6 = scalar_lea.hbm %s1928_s0, %s980_s30  ;;  %p1346_p5 = pneg %p1634_p0 }
  0x42   : > { %s1344_s9 = scalar_lea.hbm %s1646_s6, 640  ;;  %s1349_s17 = scalar_lea.hbm %s1928_s0, 2560 }
  0x43   : > { %p1345_p3 = scmp.ne.s32.totalorder %s1646_s6, %s1344_s9  ;;  %p1350_p1 = scmp.lt.u32.totalorder %s1646_s6, %s1928_s0 }
  0x44   : > { %p1351_p2 = scmp.lt.u32.totalorder %s1349_s17, %s1344_s9  ;;  %p1353_p6 = scmp.lt.u32.totalorder %s1344_s9, %s1646_s6 }
  0x45   : > { %p1347_p7 = pnand %p1346_p5, %p1345_p3 }
  0x46   : > { %p1352_p4 = por %p1351_p2, %p1350_p1 }
  0x47   : > { %p1348_p9 = pneg %p1347_p7 }
  0x48   : > { %p1354_p8 = por %p1353_p6, %p1352_p4 }
  0x4a   : > { %p1355_p10 = pnand %p1354_p8, %p1348_p9 }
  0x4c   : > { %1358 = shalt.err (!%p1355_p10)
}
  0x4d   : > { %s1359_s28 = scalar_lea.vmem %s1641_s1, 640  ;;  %s1481_s10 = smov [#allocation2]  }
  0x4e   : > { %p1360_p12 = scmp.ne.s32.totalorder %s1641_s1, %s1359_s28  ;;  %s1364_s11 = sshll.u32 %s1481_s10, 4  ;;  %s1365_s11 = int_to_ptr.vmem [resolvable:$false] %s1364_s11 }
  0x4f   : > { %s1366_s21 = scalar_lea.vmem %s1365_s11, 1280  ;;  %p1367_p7 = scmp.lt.s32.totalorder %s1641_s1, %s1365_s11 }
  0x50   : > { %p1362_p13 = pnand %p1360_p12, %p1346_p5  ;;  %p1368_p1 = scmp.lt.s32.totalorder %s1366_s21, %s1359_s28 }
  0x52   : > { %p1363_p3 = pneg %p1362_p13  ;;  %p1369_p2 = por %p1368_p1, %p1367_p7 }
  0x54   : > { %p1370_p4 = pnand %p1369_p2, %p1363_p3 }
  0x56   : > { %1373 = shalt.err (!%p1370_p4)
}
  0x57   : > { %s1482_s27 = smov 320   ;;  %s1483_s9 = smov 20  }
  0x58   : > { %1061 = dma.hbm_to_vmem [thread:$0]  (!%p1634_p0), %s1646_s6, 640, %s1641_s1, %s1648_s8, %s1482_s27, %s1482_s27, %s1483_s9  }
  0x59   : > { %p1953_p5 = scmp.ne.s32.totalorder %s1945_s26, 0 }
  0x5a   : > { %s1679_s5 = sand.u32 (!%p1953_p5), 1, %s1452_s13   ;;  %p1954_p9 = scmp.ne.s32.totalorder (!%p1953_p5), %s1943_s24, 0 }
  0x5b   : > { %194 = sbr.rel (%p1953_p5) target bundleno = 845 (0x34d), region = 28  ;;  %s197_s17 = scalar_lea.sflag (!%p1953_p5), [#allocation3], %s1679_s5 }
  0x5c   : > { %s1045_s7 = smul.u32 (!%p1953_p5), 40, %s1679_s5 }
  0x5e   : > { %s200_s30 = scalar_lea.vmem (!%p1953_p5), [#allocation2], %s1045_s7 }
  0x62   : > { %1435 = dma.done.wait (%p1954_p9), %s197_s17, 640  }
  0x63   : > { %1437 = vsyncadd (%p1954_p9), %s197_s17, 4294966656  ;;  %p1955_p6 = scmp.ne.s32.totalorder %s1941_s22, 0 }
  0x65   : > { %1439 = dma.done.wait (%p1955_p6), [#allocation6], 256  }
  0x66   : > { %1441 = vsyncadd (%p1955_p6), [#allocation6], 4294967040  ;;  %p237_p0 = scmp.lt.s32.totalorder %s1464_s16, 1  ;;  %p239_p8 = scmp.lt.s32.totalorder %s1460_s15, 1  ;;  %v987_v0 = vld [vmem:[%s200_s30 + $0x14] sm:$0xff]  ;;  %v988_v1 = vld [vmem:[%s200_s30 + $0x1c] sm:$0xff] }
  0x67   : > { %v1695_v2 = vld [vmem:[%s200_s30] sm:$0xff]  ;;  %v262_v3 = vcombine.low %v988_v1, %v988_v1  ;;  %v247_v4 = vld [vmem:[%s200_s30 + $0x8] sm:$0xff]  ;;  %v248_v7 = vld [vmem:[%s200_s30 + $0x10] sm:$0xf]  ;;  %s1484_s10 = smov 127   ;;  %v1704_v13 = vcombine.low %v987_v0, %v987_v0  ;;  %vm509_vm0 = vcmask 1043456  }
  0x68   : > { %s238_s1 = scalar_select %p237_p0, %s1464_s16, 1  ;;  %v255_v5 = vcombine.high %v1695_v2, %v1695_v2  ;;  %v1313_v6 = vld [vmem:[%s200_s30 + $0x24] ss:$0 sps:$4 sm:$0xff]   ;;  %v256_v8 = vcombine.high %v247_v4, %v247_v4  ;;  %v1490_v18 = vmov 0.0   ;;  %vm276_vm1 = vcmask 1039360  }
  0x69   : > { %s240_s26 = scalar_select %p239_p8, %s1460_s15, 1  ;;  %v1161_v9 = vpack.i.bf16 %v262_v3, %v987_v0  ;;  %v1166_v11 = vpack.i.bf16 %v1313_v6, %v988_v1  ;;  %v1171_v14 = vpack.i.bf16 %v1704_v13, %v1695_v2  ;;  %v1715_v17 = vsel %vm509_vm0, %v247_v4, %v262_v3  ;;  %692 = vmatprep.mubr.f32.mxu1 %v1490_v18 }
  0x6a   : > { %s985_s24 = sshll.u32 %s238_s1, 2  ;;  %v1151_v10 = vpack.i.bf16 %v247_v4, %v255_v5  ;;  %v1156_v12 = vpack.i.bf16 %v248_v7, %v256_v8  ;;  %v1709_v15 = vsel %vm509_vm0, %v255_v5, %v987_v0  ;;  %v1712_v16 = vsel %vm509_vm0, %v256_v8, %v988_v1  ;;  %s1485_s11 = smov 126   ;;  %615 = vmatprep.mubr.f32.mxu0 %v1490_v18 }
  0x6b   : > { %s984_s22 = sshll.u32 %s240_s26, 1  ;;  %1162 = vrot.lane.b32.xlu1 %v1161_v9, %s1484_s10  ;;  %s1486_s21 = smov 125   ;;  %v510_v49 = vsel %vm509_vm0, %v1695_v2, %v1704_v13  ;;  %vm352_vm2 = vcmask 1022976   ;;  %vm315_vm3 = vcmask 1031168   ;;  %vm426_vm4 = vcmask 1006592  }
  0x6c   : > { %s243_s20 = sadd.s32 %s985_s24, %s984_s22  ;;  %1152 = vrot.lane.b32.xlu0 %v1151_v10, %s1484_s10  ;;  %s1487_s27 = smov 124   ;;  %vm389_vm5 = vcmask 1014784   ;;  %vm463_vm6 = vcmask 998400   ;;  %vm500_vm7 = vcmask 990208   ;;  %vm1492_vm8 = vmmov 1  }
  0x6d   : > { %s986_s6 = sshll.u32 %s243_s20, 3  ;;  %s1488_s9 = smov 123   ;;  %vm1019_vm9 = vmpackc.low %vm509_vm0, %vm1492_vm8  ;;  %vm544_vm10 = vcmask 523264  }
  0x6e   : > { %s1702_s28 = scalar_lea.vmem %s1931_s3, %s986_s6  ;;  %s1489_s7 = smov 122  }
  0x6f   : > { %1167 = vrot.lane.b32.xlu1 %v1166_v11, %s1484_s10  ;;  %s1491_s17 = smov 121   ;;  %s983_s30 = sshll.u32 %s1679_s5, 6 }
  0x70   : > { %1157 = vrot.lane.b32.xlu0 %v1156_v12, %s1484_s10  ;;  %s1816_s1 = scalar_lea.vmem [#allocation7], %s983_s30  ;;  %p998_p10 = scmp.ne.s32.totalorder %s1460_s15, 1 }
  0x71   : > { %vm744_vm12 = vcmask (!%p998_p10), 7168   ;;  %vm765_vm13 = vcmask (!%p998_p10), 15368  }
  0x73   : > { %1177 = vrot.lane.b32.xlu1 %v1151_v10, %s1485_s11 }
  0x74   : > { %1172 = vrot.lane.b32.xlu0 %v1171_v14, %s1484_s10 }
  0x77   : > { %1187 = vrot.lane.b32.xlu1 %v1161_v9, %s1485_s11 }
  0x78   : > { %1182 = vrot.lane.b32.xlu0 %v1156_v12, %s1485_s11 }
  0x7b   : > { %1197 = vrot.lane.b32.xlu1 %v1151_v10, %s1486_s21 }
  0x7c   : > { %1192 = vrot.lane.b32.xlu0 %v1166_v11, %s1485_s11 }
  0x7f   : > { %1207 = vrot.lane.b32.xlu1 %v1161_v9, %s1486_s21 }
  0x80   : > { %1202 = vrot.lane.b32.xlu0 %v1156_v12, %s1486_s21 }
  0x83   : > { %1217 = vrot.lane.b32.xlu1 %v1171_v14, %s1485_s11 }
  0x84   : > { %1212 = vrot.lane.b32.xlu0 %v1166_v11, %s1486_s21 }
  0x87   : > { %1227 = vrot.lane.b32.xlu1 %v1151_v10, %s1487_s27 }
  0x88   : > { %1222 = vrot.lane.b32.xlu0 %v1171_v14, %s1486_s21 }
  0x8b   : > { %1237 = vrot.lane.b32.xlu1 %v1161_v9, %s1487_s27 }
  0x8c   : > { %1232 = vrot.lane.b32.xlu0 %v1156_v12, %s1487_s27 }
  0x8f   : > { %1247 = vrot.lane.b32.xlu1 %v1151_v10, %s1488_s9 }
  0x90   : > { %1242 = vrot.lane.b32.xlu0 %v1166_v11, %s1487_s27 }
  0x93   : > { %1257 = vrot.lane.b32.xlu1 %v1161_v9, %s1488_s9 }
  0x94   : > { %1252 = vrot.lane.b32.xlu0 %v1156_v12, %s1488_s9 }
  0x97   : > { %1267 = vrot.lane.b32.xlu1 %v1171_v14, %s1487_s27 }
  0x98   : > { %1262 = vrot.lane.b32.xlu0 %v1166_v11, %s1488_s9 }
  0x9b   : > { %1277 = vrot.lane.b32.xlu1 %v1151_v10, %s1489_s7 }
  0x9c   : > { %1272 = vrot.lane.b32.xlu0 %v1171_v14, %s1488_s9 }
  0x9f   : > { %1287 = vrot.lane.b32.xlu1 %v1161_v9, %s1489_s7 }
  0xa0   : > { %1282 = vrot.lane.b32.xlu0 %v1156_v12, %s1489_s7 }
  0xa3   : > { %1297 = vrot.lane.b32.xlu1 %v1171_v14, %s1489_s7 }
  0xa4   : > { %1292 = vrot.lane.b32.xlu0 %v1166_v11, %s1489_s7 }
  0xa7   : > { %1307 = vrot.lane.b32.xlu1 %v1156_v12, %s1491_s17 }
  0xa8   : > { %1302 = vrot.lane.b32.xlu0 %v1151_v10, %s1491_s17 }
  0xac   : > { %490 = vrot.lane.b32.xlu0 %v1695_v2, %s1491_s17 }
  0xdd   : > { %v1163_v19 = vpop.permute.xlu1 %1162 }
  0xde   : > { %v1153_v20 = vpop.permute.xlu0 %1152  ;;  %v1165_v21 = vunpack.i.h.bf16 %v1163_v19  ;;  %v1164_v22 = vunpack.i.l.bf16 %v1163_v19 }
  0xdf   : > { %v1155_v23 = vunpack.i.h.bf16 %v1153_v20  ;;  %v1154_v24 = vunpack.i.l.bf16 %v1153_v20 }
  0xe0   : > { %v298_v26 = vsel %vm276_vm1, %v1164_v22, %v1165_v21 }
  0xe1   : > { %v278_v25 = vsel %vm276_vm1, %v1154_v24, %v1155_v23  ;;  %v1168_v27 = vpop.permute.xlu1 %1167 }
  0xe2   : > { %v1158_v28 = vpop.permute.xlu0 %1157  ;;  %v515_v29 = vsel %vm509_vm0, %v278_v25, %v298_v26  ;;  %v1170_v30 = vunpack.i.h.bf16 %v1168_v27  ;;  %v1169_v31 = vunpack.i.l.bf16 %v1168_v27 }
  0xe3   : > { %v1160_v32 = vunpack.i.h.bf16 %v1158_v28  ;;  %v1159_v33 = vunpack.i.l.bf16 %v1158_v28  ;;  %v1006_v34 = vpack.c.bf16 %v515_v29, %v1709_v15 }
  0xe4   : > { %v300_v36 = vsel %vm276_vm1, %v1169_v31, %v1170_v30  ;;  %v299_v38 = vsel %vm276_vm1, %v1165_v21, %v1169_v31 }
  0xe5   : > { %v280_v35 = vsel %vm276_vm1, %v1159_v33, %v1160_v32  ;;  %v279_v37 = vsel %vm276_vm1, %v1155_v23, %v1159_v33  ;;  %1007 = vmatprep.subr.bf16.mxu0 %v1006_v34  ;;  %v1728_v39 = vpop.permute.xlu1 %1177 }
  0xe6   : > { %v1173_v40 = vpop.permute.xlu0 %1172  ;;  %v517_v41 = vsel %vm509_vm0, %v280_v35, %v300_v36  ;;  %v516_v42 = vsel %vm509_vm0, %v279_v37, %v299_v38  ;;  %v1180_v60 = vunpack.i.h.bf16 %v1728_v39  ;;  %v1179_v61 = vunpack.i.l.bf16 %v1728_v39 }
  0xe7   : > { %v1175_v43 = vunpack.i.h.bf16 %v1173_v40  ;;  %v1174_v44 = vunpack.i.l.bf16 %v1173_v40  ;;  %v1024_v45 = vpack.c.bf16 %v517_v41, %v1712_v16  ;;  %v1026_v46 = vpack.c.bf16 %v516_v42, %v1715_v17 }
  0xe8   : > { %v317_v9 = vsel %vm315_vm3, %v1179_v61, %v1180_v60 }
  0xe9   : > { %v277_v47 = vsel %vm276_vm1, %v1174_v44, %v1154_v24  ;;  %v297_v48 = vsel %vm276_vm1, %v1175_v43, %v1164_v22  ;;  %1025 = vmatprep.subr.bf16.mxu1 %v1024_v45  ;;  %v1188_v50 = vpop.permute.xlu1 %1187 }
  0xea   : > { %v1183_v51 = vpop.permute.xlu0 %1182  ;;  %v514_v52 = vsel %vm509_vm0, %v277_v47, %v297_v48  ;;  %1027 = vmatpush1.bf16.msra.mxu1 %v1026_v46  ;;  %v1190_v56 = vunpack.i.h.bf16 %v1188_v50  ;;  %v1189_v57 = vunpack.i.l.bf16 %v1188_v50 }
  0xeb   : > { %v1008_v53 = vpack.c.bf16 %v514_v52, %v510_v49  ;;  %v1185_v10 = vunpack.i.h.bf16 %v1183_v51  ;;  %v1184_v11 = vunpack.i.l.bf16 %v1183_v51 }
  0xec   : > { %v335_v3 = vsel %vm315_vm3, %v1189_v57, %v1190_v56 }
  0xed   : > { %1009 = vmatpush1.bf16.msra.mxu0 %v1008_v53  ;;  %v1198_v54 = vpop.permute.xlu1 %1197  ;;  %v519_v19 = vsel %vm509_vm0, %v317_v9, %v335_v3  ;;  %v318_v28 = vsel %vm315_vm3, %v1180_v60, %v1184_v11  ;;  %v319_v29 = vsel %vm315_vm3, %v1184_v11, %v1185_v10 }
  0xee   : > { %v1193_v55 = vpop.permute.xlu0 %1192  ;;  %v1200_v58 = vunpack.i.h.bf16 %v1198_v54  ;;  %v1199_v59 = vunpack.i.l.bf16 %v1198_v54 }
  0xef   : > { %v1194_v0 = vunpack.i.l.bf16 %v1193_v55  ;;  %v1195_v4 = vunpack.i.h.bf16 %v1193_v55 }
  0xf0   : > { %v354_v5 = vsel %vm352_vm2, %v1199_v59, %v1200_v58 }
  0xf1   : > { %v1208_v62 = vpop.permute.xlu1 %1207  ;;  %v336_v15 = vsel %vm315_vm3, %v1190_v56, %v1194_v0  ;;  %v337_v20 = vsel %vm315_vm3, %v1194_v0, %v1195_v4 }
  0xf2   : > { %v1203_v63 = vpop.permute.xlu0 %1202  ;;  %v1210_v1 = vunpack.i.h.bf16 %v1208_v62  ;;  %v1209_v2 = vunpack.i.l.bf16 %v1208_v62  ;;  %v521_v36 = vsel %vm509_vm0, %v319_v29, %v337_v20  ;;  %v520_v37 = vsel %vm509_vm0, %v318_v28, %v336_v15 }
  0xf3   : > { %v1205_v7 = vunpack.i.h.bf16 %v1203_v63  ;;  %v1204_v8 = vunpack.i.l.bf16 %v1203_v63 }
  0xf4   : > { %v372_v6 = vsel %vm352_vm2, %v1209_v2, %v1210_v1 }
  0xf5   : > { %v1218_v12 = vpop.permute.xlu1 %1217  ;;  %v523_v14 = vsel %vm509_vm0, %v354_v5, %v372_v6  ;;  %v355_v24 = vsel %vm352_vm2, %v1200_v58, %v1204_v8  ;;  %v356_v25 = vsel %vm352_vm2, %v1204_v8, %v1205_v7 }
  0xf6   : > { %v1213_v13 = vpop.permute.xlu0 %1212  ;;  %v1220_v21 = vunpack.i.h.bf16 %v1218_v12  ;;  %v1219_v22 = vunpack.i.l.bf16 %v1218_v12  ;;  %v1010_v23 = vpack.c.bf16 %v523_v14, %v519_v19 }
  0xf7   : > { %v1215_v16 = vunpack.i.h.bf16 %v1213_v13  ;;  %v1214_v17 = vunpack.i.l.bf16 %v1213_v13 }
  0xf8   : > { %1011 = vmatprep.subr.bf16.mxu0 %v1010_v23  ;;  %v316_v38 = vsel %vm315_vm3, %v1219_v22, %v1179_v61  ;;  %v334_v39 = vsel %vm315_vm3, %v1220_v21, %v1189_v57 }
  0xf9   : > { %v373_v26 = vsel %vm352_vm2, %v1210_v1, %v1214_v17  ;;  %v374_v27 = vsel %vm352_vm2, %v1214_v17, %v1215_v16  ;;  %v1756_v30 = vpop.permute.xlu1 %1227  ;;  %v518_v47 = vsel %vm509_vm0, %v316_v38, %v334_v39 }
  0xfa   : > { %v1223_v31 = vpop.permute.xlu0 %1222  ;;  %v525_v32 = vsel %vm509_vm0, %v356_v25, %v374_v27  ;;  %v524_v33 = vsel %vm509_vm0, %v355_v24, %v373_v26  ;;  %v1230_v55 = vunpack.i.h.bf16 %v1756_v30  ;;  %v1229_v56 = vunpack.i.l.bf16 %v1756_v30 }
  0xfb   : > { %v1225_v34 = vunpack.i.h.bf16 %v1223_v31  ;;  %v1224_v35 = vunpack.i.l.bf16 %v1223_v31  ;;  %v1028_v40 = vpack.c.bf16 %v525_v32, %v521_v36  ;;  %v1030_v41 = vpack.c.bf16 %v524_v33, %v520_v37 }
  0xfc   : > { %v391_v4 = vsel %vm389_vm5, %v1229_v56, %v1230_v55 }
  0xfd   : > { %v371_v42 = vsel %vm352_vm2, %v1225_v34, %v1209_v2  ;;  %v353_v43 = vsel %vm352_vm2, %v1224_v35, %v1199_v59  ;;  %1029 = vmatprep.subr.bf16.mxu1 %v1028_v40  ;;  %v1238_v44 = vpop.permute.xlu1 %1237 }
  0xfe   : > { %v1233_v45 = vpop.permute.xlu0 %1232  ;;  %v522_v46 = vsel %vm509_vm0, %v353_v43, %v371_v42  ;;  %1031 = vmatpush1.bf16.msra.mxu1 %v1030_v41  ;;  %v1240_v51 = vunpack.i.h.bf16 %v1238_v44  ;;  %v1239_v52 = vunpack.i.l.bf16 %v1238_v44 }
  0xff   : > { %v1012_v48 = vpack.c.bf16 %v522_v46, %v518_v47  ;;  %v1235_v5 = vunpack.i.h.bf16 %v1233_v45  ;;  %v1234_v6 = vunpack.i.l.bf16 %v1233_v45 }
 0x100   : > { %v409_v62 = vsel %vm389_vm5, %v1239_v52, %v1240_v51 }
 0x101   : > { %1013 = vmatpush1.bf16.msra.mxu0 %v1012_v48  ;;  %v1248_v49 = vpop.permute.xlu1 %1247  ;;  %v527_v13 = vsel %vm509_vm0, %v391_v4, %v409_v62  ;;  %v392_v23 = vsel %vm389_vm5, %v1230_v55, %v1234_v6  ;;  %v393_v24 = vsel %vm389_vm5, %v1234_v6, %v1235_v5 }
 0x102   : > { %v1243_v50 = vpop.permute.xlu0 %1242  ;;  %v1250_v53 = vunpack.i.h.bf16 %v1248_v49  ;;  %v1249_v54 = vunpack.i.l.bf16 %v1248_v49 }
 0x103   : > { %v1244_v59 = vunpack.i.l.bf16 %v1243_v50  ;;  %v1245_v63 = vunpack.i.h.bf16 %v1243_v50 }
 0x104   : > { %v428_v0 = vsel %vm426_vm4, %v1249_v54, %v1250_v53 }
 0x105   : > { %v1258_v57 = vpop.permute.xlu1 %1257  ;;  %v410_v10 = vsel %vm389_vm5, %v1240_v51, %v1244_v59  ;;  %v411_v14 = vsel %vm389_vm5, %v1244_v59, %v1245_v63 }
 0x106   : > { %v1253_v58 = vpop.permute.xlu0 %1252  ;;  %v1260_v60 = vunpack.i.h.bf16 %v1258_v57  ;;  %v1259_v61 = vunpack.i.l.bf16 %v1258_v57  ;;  %v529_v31 = vsel %vm509_vm0, %v393_v24, %v411_v14  ;;  %v528_v32 = vsel %vm509_vm0, %v392_v23, %v410_v10 }
 0x107   : > { %v1255_v2 = vunpack.i.h.bf16 %v1253_v58  ;;  %v1254_v3 = vunpack.i.l.bf16 %v1253_v58 }
 0x108   : > { %v446_v1 = vsel %vm426_vm4, %v1259_v61, %v1260_v60 }
 0x109   : > { %v1268_v7 = vpop.permute.xlu1 %1267  ;;  %v531_v9 = vsel %vm509_vm0, %v428_v0, %v446_v1  ;;  %v429_v19 = vsel %vm426_vm4, %v1250_v53, %v1254_v3  ;;  %v430_v20 = vsel %vm426_vm4, %v1254_v3, %v1255_v2 }
 0x10a   : > { %v1263_v8 = vpop.permute.xlu0 %1262  ;;  %v1270_v15 = vunpack.i.h.bf16 %v1268_v7  ;;  %v1269_v16 = vunpack.i.l.bf16 %v1268_v7  ;;  %v1014_v17 = vpack.c.bf16 %v531_v9, %v527_v13 }
 0x10b   : > { %v1265_v11 = vunpack.i.h.bf16 %v1263_v8  ;;  %v1264_v12 = vunpack.i.l.bf16 %v1263_v8 }
 0x10c   : > { %1015 = vmatprep.subr.bf16.mxu0 %v1014_v17  ;;  %v390_v33 = vsel %vm389_vm5, %v1269_v16, %v1229_v56  ;;  %v408_v34 = vsel %vm389_vm5, %v1270_v15, %v1239_v52 }
 0x10d   : > { %v447_v21 = vsel %vm426_vm4, %v1260_v60, %v1264_v12  ;;  %v448_v22 = vsel %vm426_vm4, %v1264_v12, %v1265_v11  ;;  %v1278_v25 = vpop.permute.xlu1 %1277  ;;  %v526_v42 = vsel %vm509_vm0, %v390_v33, %v408_v34 }
 0x10e   : > { %v1273_v26 = vpop.permute.xlu0 %1272  ;;  %v533_v27 = vsel %vm509_vm0, %v430_v20, %v448_v22  ;;  %v532_v28 = vsel %vm509_vm0, %v429_v19, %v447_v21  ;;  %v1280_v46 = vunpack.i.h.bf16 %v1278_v25  ;;  %v1279_v47 = vunpack.i.l.bf16 %v1278_v25  ;;  %v542_v20 = vld [vmem:[#allocation5] sm:$0xff]  ;;  %v543_v21 = vld [vmem:[#allocation5 + $0x8] sm:$0xff] }
 0x10f   : > { %v1275_v29 = vunpack.i.h.bf16 %v1273_v26  ;;  %v1274_v30 = vunpack.i.l.bf16 %v1273_v26  ;;  %v1032_v35 = vpack.c.bf16 %v533_v27, %v529_v31  ;;  %v1034_v36 = vpack.c.bf16 %v532_v28, %v528_v32 }
 0x110   : > { %v465_v58 = vsel %vm463_vm6, %v1279_v47, %v1280_v46 }
 0x111   : > { %v445_v37 = vsel %vm426_vm4, %v1275_v29, %v1259_v61  ;;  %v427_v38 = vsel %vm426_vm4, %v1274_v30, %v1249_v54  ;;  %1033 = vmatprep.subr.bf16.mxu1 %v1032_v35  ;;  %v1288_v39 = vpop.permute.xlu1 %1287  ;;  %v717_v29 = vlaneseq (!%p998_p10) }
 0x112   : > { %v1283_v40 = vpop.permute.xlu0 %1282  ;;  %v530_v41 = vsel %vm509_vm0, %v427_v38, %v445_v37  ;;  %1035 = vmatpush1.bf16.msra.mxu1 %v1034_v36  ;;  %v1290_v44 = vunpack.i.h.bf16 %v1288_v39  ;;  %v1289_v45 = vunpack.i.l.bf16 %v1288_v39 }
 0x113   : > { %v1016_v43 = vpack.c.bf16 %v530_v41, %v526_v42  ;;  %v1285_v48 = vunpack.i.h.bf16 %v1283_v40  ;;  %v1284_v49 = vunpack.i.l.bf16 %v1283_v40  ;;  %v718_v35 = vand.u32 (!%p998_p10), 127, %v717_v29 }
 0x114   : > { %v483_v56 = vsel %vm463_vm6, %v1289_v45, %v1290_v44 }
 0x115   : > { %1017 = vmatpush1.bf16.msra.mxu0 %v1016_v43  ;;  %v1298_v50 = vpop.permute.xlu1 %1297  ;;  %v466_v59 = vsel %vm463_vm6, %v1280_v46, %v1284_v49  ;;  %v467_v60 = vsel %vm463_vm6, %v1284_v49, %v1285_v48  ;;  %v535_v5 = vsel %vm509_vm0, %v465_v58, %v483_v56  ;;  %v721_v39 = vadd.s32 (!%p998_p10), 384, %v718_v35 }
 0x116   : > { %v1293_v51 = vpop.permute.xlu0 %1292  ;;  %v1300_v54 = vunpack.i.h.bf16 %v1298_v50  ;;  %v1299_v55 = vunpack.i.l.bf16 %v1298_v50 }
 0x117   : > { %v1295_v52 = vunpack.i.h.bf16 %v1293_v51  ;;  %v1294_v53 = vunpack.i.l.bf16 %v1293_v51  ;;  %vm725_vm11 = vcmp.lt.s32.totalorder (!%p998_p10), %v721_v39, 488 }
 0x118   : > { %v464_v6 = vsel %vm463_vm6, %v1299_v55, %v1279_v47  ;;  %v482_v7 = vsel %vm463_vm6, %v1300_v54, %v1289_v45 }
 0x119   : > { %v485_v57 = vsel %vm463_vm6, %v1294_v53, %v1295_v52  ;;  %v484_v61 = vsel %vm463_vm6, %v1290_v44, %v1294_v53  ;;  %v1308_v62 = vpop.permute.xlu1 %1307  ;;  %v534_v16 = vsel %vm509_vm0, %v464_v6, %v482_v7 }
 0x11a   : > { %v1303_v63 = vpop.permute.xlu0 %1302  ;;  %v1310_v0 = vunpack.i.h.bf16 %v1308_v62  ;;  %v1309_v1 = vunpack.i.l.bf16 %v1308_v62  ;;  %v537_v4 = vsel %vm509_vm0, %v467_v60, %v485_v57  ;;  %v536_v11 = vsel %vm509_vm0, %v466_v59, %v484_v61 }
 0x11b   : > { %v1305_v2 = vunpack.i.h.bf16 %v1303_v63  ;;  %v1304_v3 = vunpack.i.l.bf16 %v1303_v63 }
 0x11c   : > { %v504_v8 = vsel %vm500_vm7, %v1309_v1, %v1310_v0 }
 0x11d   : > { %v503_v9 = vsel %vm500_vm7, %v1305_v2, %v1309_v1  ;;  %v502_v10 = vsel %vm500_vm7, %v1304_v3, %v1305_v2  ;;  %v1036_v12 = vpack.c.bf16 %v504_v8, %v537_v4 }
 0x11e   : > { %v1018_v13 = vpack.c.bf16 %v502_v10, %v535_v5  ;;  %v1039_v14 = vpack.c.bf16 %v503_v9, %v536_v11  ;;  %v491_v15 = vpop.permute.xlu0 %490 }
 0x11f   : > { %v501_v17 = vsel %vm500_vm7, %v491_v15, %v1304_v3  ;;  %1038 = vmatprep.subr.msk.bf16.mxu1 %vm1019_vm9, %v1036_v12 }
 0x120   : > { %v1021_v19 = vpack.c.bf16 %v501_v17, %v534_v16  ;;  %1020 = vmatprep.subr.msk.bf16.mxu0 %vm1019_vm9, %v1018_v13  ;;  %1041 = vmatpush1.bf16.msk.msra.mxu1 %vm1019_vm9, %v1039_v14 }
 0x122   : > { %1023 = vmatpush1.bf16.msk.msra.mxu0 %vm1019_vm9, %v1021_v19 }
 0x123   : > { %996 = vmatmul.mubr.msk.f32.vlgmr.msra.gmra.mrb[0].mxu1 %vm544_vm10, %v542_v20 }
 0x124   : > { %698 = vmatprep.mubr.f32.mxu1 %v1490_v18 }
 0x125   : > { %992 = vmatmul.mubr.msk.f32.vlgmr.msra.gmra.mrb[0].mxu0 %vm544_vm10, %v542_v20 }
 0x126   : > { %621 = vmatprep.mubr.f32.mxu0 %v1490_v18 }
 0x127   : > { %997 = vmatmul.mubr.msk.f32.gmra.mrb[2].mxu1 %vm544_vm10, %v543_v21 }
 0x129   : > { %993 = vmatmul.mubr.msk.f32.gmra.mrb[2].mxu0 %vm544_vm10, %v543_v21 }
 0x1f6   : > { %v1814_v22 = vpop.f32.mrb[0].mxu1 }
 0x1f7   : > { %707 = vst [vmem:[%s1816_s1 + $0x10] sm:$0xff] %v1814_v22  ;;  %v1820_v24 = vpop.f32.mrb[1].mxu1  ;;  %v749_v36 = vmul.f32 (!%p998_p10), %v1814_v22, %v1814_v22 }
 0x1f8   : > { %v617_v23 = vpop.f32.mrb[0].mxu0  ;;  %708 = vst [vmem:[%s1816_s1 + $0x18] sm:$0xff] %v1820_v24  ;;  %716 = sbr.rel (%p998_p10) target bundleno = 661 (0x295), region = 40  ;;  %v729_v45 = vsel (!%p998_p10), %vm725_vm11, %v1820_v24, 0.0 }
 0x1f9   : > { %705 = vst [vmem:[%s1816_s1] sm:$0xff] %v617_v23  ;;  %v619_v18 = vpop.f32.mrb[1].mxu0  ;;  %v747_v31 = vmul.f32 (!%p998_p10), %v617_v23, %v617_v23  ;;  %v750_v48 = vmul.f32 (!%p998_p10), %v729_v45, %v729_v45 }
 0x1fa   : > { %706 = vst [vmem:[%s1816_s1 + $0x8] sm:$0xff] %v619_v18  ;;  %v1826_v25 = vpop.f32.mrb[2].mxu1  ;;  %v734_v30 = vadd.f32 (!%p998_p10), %v619_v18, %v617_v23  ;;  %v748_v32 = vmul.f32 (!%p998_p10), %v619_v18, %v619_v18 }
 0x1fb   : > { %711 = vst [vmem:[%s1816_s1 + $0x30] sm:$0xff] %v1826_v25  ;;  %v1830_v27 = vpop.f32.mrb[3].mxu1  ;;  %v753_v41 = vmul.f32 (!%p998_p10), %v1826_v25, %v1826_v25 }
 0x1fc   : > { %v623_v26 = vpop.f32.mrb[2].mxu0  ;;  %712 = vst [vmem:[%s1816_s1 + $0x38] sm:$0xff] %v1830_v27  ;;  %v755_v37 = vadd.f32 (!%p998_p10), %v748_v32, %v747_v31  ;;  %v735_v40 = vadd.f32 (!%p998_p10), %v734_v30, %v1814_v22  ;;  %v733_v46 = vsel (!%p998_p10), %vm725_vm11, %v1830_v27, 0.0 }
 0x1fd   : > { %709 = vst [vmem:[%s1816_s1 + $0x20] sm:$0xff] %v623_v26  ;;  %v625_v28 = vpop.f32.mrb[3].mxu0  ;;  %v751_v33 = vmul.f32 (!%p998_p10), %v623_v26, %v623_v26  ;;  %v754_v49 = vmul.f32 (!%p998_p10), %v733_v46, %v733_v46 }
 0x1fe   : > { %710 = vst [vmem:[%s1816_s1 + $0x28] sm:$0xff] %v625_v28  ;;  %v752_v34 = vmul.f32 (!%p998_p10), %v625_v28, %v625_v28  ;;  %v739_v38 = vadd.f32 (!%p998_p10), %v625_v28, %v623_v26  ;;  %v756_v43 = vadd.f32 (!%p998_p10), %v755_v37, %v749_v36  ;;  %v736_v47 = vadd.f32 (!%p998_p10), %v735_v40, %v729_v45 }
 0x200   : > { %v760_v42 = vadd.f32 %v752_v34, %v751_v33  ;;  %v740_v44 = vadd.f32 %v739_v38, %v1826_v25  ;;  %737 = vadd.xlane.f32.xlu0 %v736_v47  ;;  %v757_v51 = vadd.f32 %v756_v43, %v750_v48 }
 0x202   : > { %v761_v50 = vadd.f32 %v760_v42, %v753_v41  ;;  %v741_v52 = vadd.f32 %v740_v44, %v733_v46  ;;  %758 = vadd.xlane.f32.xlu1 %v757_v51 }
 0x204   : > { %v762_v53 = vadd.f32 %v761_v50, %v754_v49  ;;  %742 = vadd.xlane.f32.xlu0 %v741_v52 }
 0x206   : > { %763 = vadd.xlane.f32.xlu1 %v762_v53 }
 0x28d   : > { %v738_v54 = vpop.xlane.xlu0 %737 }
 0x28e   : > { %745 = vst.msk [vmem:[%s1702_s28] sm:$0xff] %vm744_vm12, %v738_v54 }
 0x28f   : > { %v759_v55 = vpop.xlane.xlu1 %758 }
 0x290   : > { %766 = vst.msk [vmem:[%s1702_s28] sm:$0xff] %vm765_vm13, %v759_v55 }
 0x291   : > { %v743_v56 = vpop.xlane.xlu0 %742 }
 0x292   : > { %746 = vst.msk [vmem:[%s1702_s28 + $0x8] sm:$0xff] %vm744_vm12, %v743_v56 }
 0x293   : > { %v764_v57 = vpop.xlane.xlu1 %763 }
 0x294   : > { %767 = vst.msk [vmem:[%s1702_s28 + $0x8] sm:$0xff] %vm765_vm13, %v764_v57 }
 0x295 PF: > { %p999_p12 = scmp.eq.s32.totalorder %s1460_s15, 1 }
 0x296   : > { %v772_v58 = vadd.f32 (!%p999_p12), %v619_v18, %v617_v23  ;;  %v785_v59 = vmul.f32 (!%p999_p12), %v617_v23, %v617_v23  ;;  %v786_v60 = vmul.f32 (!%p999_p12), %v619_v18, %v619_v18  ;;  %v787_v61 = vmul.f32 (!%p999_p12), %v1814_v22, %v1814_v22 }
 0x297   : > { %771 = sbr.rel (%p999_p12) target bundleno = 817 (0x331), region = 44  ;;  %v777_v62 = vadd.f32 (!%p999_p12), %v625_v28, %v623_v26  ;;  %v789_v63 = vmul.f32 (!%p999_p12), %v623_v26, %v623_v26  ;;  %v790_v0 = vmul.f32 (!%p999_p12), %v625_v28, %v625_v28  ;;  %v788_v2 = vmul.f32 (!%p999_p12), %v1820_v24, %v1820_v24 }
 0x298   : > { %v773_v1 = vadd.f32 (!%p999_p12), %v772_v58, %v1814_v22  ;;  %v793_v3 = vadd.f32 (!%p999_p12), %v786_v60, %v785_v59  ;;  %v791_v4 = vmul.f32 (!%p999_p12), %v1826_v25, %v1826_v25  ;;  %v792_v9 = vmul.f32 (!%p999_p12), %v1830_v27, %v1830_v27 }
 0x299   : > { %v778_v5 = vadd.f32 (!%p999_p12), %v777_v62, %v1826_v25  ;;  %v798_v6 = vadd.f32 (!%p999_p12), %v790_v0, %v789_v63  ;;  %vm782_vm14 = vcmask (!%p999_p12), 7168   ;;  %vm803_vm15 = vcmask (!%p999_p12), 15368  }
 0x29a   : > { %v774_v7 = vadd.f32 (!%p999_p12), %v773_v1, %v1820_v24  ;;  %v794_v8 = vadd.f32 (!%p999_p12), %v793_v3, %v787_v61 }
 0x29b   : > { %v799_v10 = vadd.f32 (!%p999_p12), %v798_v6, %v791_v4  ;;  %v779_v12 = vadd.f32 (!%p999_p12), %v778_v5, %v1830_v27 }
 0x29c   : > { %775 = vadd.xlane.f32.xlu0 (!%p999_p12), %v774_v7  ;;  %v795_v11 = vadd.f32 (!%p999_p12), %v794_v8, %v788_v2 }
 0x29d   : > { %v800_v13 = vadd.f32 (!%p999_p12), %v799_v10, %v792_v9 }
 0x29e   : > { %796 = vadd.xlane.f32.xlu1 %v795_v11 }
 0x2a0   : > { %780 = vadd.xlane.f32.xlu0 %v779_v12 }
 0x2a2   : > { %801 = vadd.xlane.f32.xlu1 %v800_v13 }
 0x329   : > { %v776_v14 = vpop.xlane.xlu0 %775 }
 0x32a   : > { %783 = vst.msk [vmem:[%s1702_s28] sm:$0xff] %vm782_vm14, %v776_v14 }
 0x32b   : > { %v797_v15 = vpop.xlane.xlu1 %796 }
 0x32c   : > { %804 = vst.msk [vmem:[%s1702_s28] sm:$0xff] %vm803_vm15, %v797_v15 }
 0x32d   : > { %v781_v16 = vpop.xlane.xlu0 %780 }
 0x32e   : > { %784 = vst.msk [vmem:[%s1702_s28 + $0x8] sm:$0xff] %vm782_vm14, %v781_v16 }
 0x32f   : > { %v802_v17 = vpop.xlane.xlu1 %801 }
 0x330   : > { %805 = vst.msk [vmem:[%s1702_s28 + $0x8] sm:$0xff] %vm803_vm15, %v802_v17 }
 0x331 PF: > { %s1001_s26 = sshll.u32 %s1460_s15, 2  ;;  %s1002_s24 = sshll.u32 %s1464_s16, 4 }
 0x332   : > { %s831_s22 = sshll.u32 %s1816_s1, 4  ;;  %s828_s20 = sadd.s32 %s1002_s24, %s1001_s26  ;;  %s1869_s22 = int_to_ptr.vmem [resolvable:$true] %s831_s22 }
 0x333   : > { %s1003_s6 = sshll.u32 %s828_s20, 7  ;;  %s807_s10 = scalar_lea.sflag [#allocation4], %s1679_s5 }
 0x334   : > { %s1874_s28 = scalar_lea.hbm %s1930_s2, %s1003_s6  ;;  %s1374_s11 = scalar_lea.vmem %s1869_s22, 1024 }
 0x335   : > { %p1375_p13 = scmp.ne.s32.totalorder %s1869_s22, %s1374_s11  ;;  %s1493_s15 = smov [#allocation7]  }
 0x336   : > { %s1378_s16 = sshll.u32 %s1493_s15, 4  ;;  %s1379_s16 = int_to_ptr.vmem [resolvable:$false] %s1378_s16 }
 0x337   : > { %p1376_p3 = pnand %p1375_p13, %p1622_p11  ;;  %s1380_s21 = scalar_lea.vmem %s1379_s16, 2048 }
 0x338   : > { %p1381_p1 = scmp.lt.s32.totalorder %s1869_s22, %s1379_s16  ;;  %p1382_p2 = scmp.lt.s32.totalorder %s1380_s21, %s1374_s11 }
 0x339   : > { %p1377_p7 = pneg %p1376_p3 }
 0x33a   : > { %p1383_p4 = por %p1382_p2, %p1381_p1 }
 0x33c   : > { %p1384_p5 = pnand %p1383_p4, %p1377_p7 }
 0x33e   : > { %1387 = shalt.err (!%p1384_p5)
}
 0x33f   : > { %s1388_s27 = scalar_lea.hbm %s1874_s28, 1024  ;;  %s1392_s17 = scalar_lea.hbm %s1930_s2, 4096 }
 0x340   : > { %p1389_p9 = scmp.ne.s32.totalorder %s1874_s28, %s1388_s27  ;;  %p1393_p8 = scmp.lt.u32.totalorder %s1874_s28, %s1930_s2 }
 0x341   : > { %p1394_p10 = scmp.lt.u32.totalorder %s1392_s17, %s1388_s27  ;;  %p1396_p13 = scmp.lt.u32.totalorder %s1388_s27, %s1874_s28 }
 0x342   : > { %p1390_p6 = pnand %p1389_p9, %p1622_p11 }
 0x343   : > { %p1395_p12 = por %p1394_p10, %p1393_p8 }
 0x344   : > { %p1391_p0 = pneg %p1390_p6 }
 0x345   : > { %p1397_p3 = por %p1396_p13, %p1395_p12 }
 0x347   : > { %p1398_p7 = pnand %p1397_p3, %p1391_p0 }
 0x349   : > { %1401 = shalt.err (!%p1398_p7)
}
 0x34a   : > { %s1494_s26 = smov 512   ;;  %s1495_s24 = smov 1024  }
 0x34b   : > { %s1496_s20 = smov 32  }
 0x34c   : > { %1052 = dma.vmem_to_hbm [thread:$0]  (%p1622_p11), %s1869_s22, 1024, %s1874_s28, %s807_s10, %s1494_s26, %s1495_s24, %s1496_s20  }
 0x34d PF: > { %p1069_p1 = scmp.ge.s32.totalorder %s1476_s19, 2  ;;  %s849_s6 = sand.u32 1, %s1448_s12  }
 0x34e   : > { %p1956_p2 = scmp.ne.s32.totalorder %s1944_s25, 0  ;;  %s850_s8 = scalar_lea.sflag [#allocation4], %s849_s6 }
 0x350   : > { %p1063_p4 = pnand %p1069_p1, %p1956_p2 }
 0x352   : > { %1443 = dma.done.wait (!%p1063_p4), %s850_s8, 1024  }
 0x353   : > { %1445 = vsyncadd (!%p1063_p4), %s850_s8, 4294966272  ;;  %s21_s19 = sadd.s32 1, %s1476_s19   ;;  %s1957_s15 = sld [smem:[#allocation11_spill]] }
 0x354   : > { %p18_p5 = scmp.ge.s32.totalorder %s21_s19, 6   ;;  %s1958_s17 = sld [smem:[#allocation12_spill]] }
 0x355   : > { %s1959_s29 = sld [smem:[#allocation13_spill]]  ;;  %s1960_s12 = smov %s1452_s13 }
 0x356   : > { %s1961_s13 = smov %s1456_s14  ;;  %s1962_s14 = smov %s1639_s23 }
 0x357   : > { %s1963_s16 = smov %s1472_s18  ;;  %20 = sbr.rel (!%p18_p5) target bundleno = 10 (0xa), region = 98 }
 0x35b   : > { %s1964_s18 = smov %s1959_s29 }
 0x35e   :  { %867 = vsyncpa [#allocation3], 1 }
 0x35f   :  { %869 = vsyncpa [#allocation3 + $0x1], 1 }
 0x360   :  { %870 = vsyncpa [#allocation6], 1 }
 0x361   :  { %871 = vsyncpa [#allocation4], 1 }
 0x362   :  { %873 = vsyncpa [#allocation4 + $0x1], 1 }

</bundles_post_ra>
